<compile_context>
chip_gen: v5e
topology: v5e:2x2
jax: 0.10.0
libtpu: 0.0.40
codegen_flags: <defaults>
</compile_context>

<pallas_src>
import functools

import jax
import jax.numpy as jnp
from jax.experimental import pallas as pl
from jax.experimental.pallas import tpu as pltpu

_INV_SQRT2 = 0.7071067811865476  # 1/sqrt(2)


def _gelu_exact(x):
    # nn.GELU() default = exact erf formulation (computed here in f32).
    return 0.5 * x * (1.0 + jax.lax.erf(x * _INV_SQRT2))


def falcon_mlp_kernel(x_ref, w1_ref, w2_ref, o_ref, acc_ref):
    """Grid = (M//tm, F4//tf); one step does one (row-tile, ffn-chunk) pair.

    x_ref  : (tm, H)   row tile of activations (resident across the ffn axis)
    w1_ref : (H, tf)   chunk of dense_h_to_4h weight (transposed)
    w2_ref : (tf, H)   chunk of dense_4h_to_h weight (transposed)
    o_ref  : (tm, H)   output row tile (written once, on the last ffn step)
    acc_ref: (tm, H)   f32 VMEM accumulator scratch
    """
    k = pl.program_id(1)

    @pl.when(k == 0)
    def _():
        acc_ref[...] = jnp.zeros_like(acc_ref)

    # First matmul: (tm, H) @ (H, tf) -> f32 (tm, tf), then exact GELU.
    h = jnp.dot(x_ref[...], w1_ref[...], preferred_element_type=jnp.float32)
    h = _gelu_exact(h)
    # Second matmul: cast to the weight dtype so bf16 weights run the MXU at
    # full rate; accumulate in f32.
    acc_ref[...] += jnp.dot(
        h.astype(w2_ref.dtype), w2_ref[...], preferred_element_type=jnp.float32
    )

    @pl.when(k == pl.num_programs(1) - 1)
    def _():
        o_ref[...] = acc_ref[...].astype(o_ref.dtype)


def _pick_tile(dim, target, base):
    """Largest multiple of `base` that divides `dim` and is <= target.
    Falls back to the full extent (always a legal block size)."""
    t = min(target, dim)
    t = (t // base) * base
    while t >= base:
        if dim % t == 0:
            return t
        t -= base
    return dim


def _vmem_footprint(tm, tf, H, x_bytes, w_bytes, o_bytes):
    """Double-buffered input/output tiles + f32 accumulator scratch."""
    return (
        2 * tm * H * x_bytes       # x row tile
        + 2 * H * tf * w_bytes     # w1 chunk
        + 2 * tf * H * w_bytes     # w2 chunk
        + 2 * tm * H * o_bytes     # output row tile
        + tm * H * 4               # f32 accumulator
    )


def _auto_tiles(M, H, F4, x_bytes, w_bytes, budget=48 * 1024 * 1024):
    """Pick (tm, tf): largest candidates whose working set fits the budget."""
    best = None
    for tf_target in (512, 256, 128):
        for tm_target in (256, 128, 64, 32, 16, 8):
            tm = _pick_tile(M, tm_target, 8)
            tf = _pick_tile(F4, tf_target, 128)
            if best is None:
                best = (tm, tf)
            if _vmem_footprint(tm, tf, H, x_bytes, w_bytes, x_bytes) <= budget:
                return tm, tf
    return best  # smallest candidates; may exceed budget for huge H


@functools.partial(jax.jit, static_argnames=("tm", "tf"))
def falcon_mlp(x, w1, w2, *, tm=None, tf=None):
    """x: (B, S, H); w1: (H, 4H); w2: (4H, H) -> (B, S, H) in x.dtype."""
    B, S, H = x.shape
    F4 = w1.shape[1]
    assert w1.shape == (H, F4) and w2.shape == (F4, H)

    M = B * S
    x2d = x.reshape(M, H)

    x_bytes = jnp.dtype(x.dtype).itemsize
    w_bytes = jnp.dtype(w1.dtype).itemsize

    if tm is None or tf is None:
        atm, atf = _auto_tiles(M, H, F4, x_bytes, w_bytes)
        tm = atm if tm is None else tm
        tf = atf if tf is None else tf
    assert M % tm == 0 and F4 % tf == 0

    grid_m = M // tm
    grid_k = F4 // tf

    cost = pl.CostEstimate(
        flops=4 * M * H * F4,
        transcendentals=M * F4,
        # Weights re-streamed once per M tile; x/out read/written once.
        bytes_accessed=(
            grid_m * (H * F4 + F4 * H) * w_bytes + 2 * M * H * x_bytes
        ),
    )

    out = pl.pallas_call(
        falcon_mlp_kernel,
        out_shape=jax.ShapeDtypeStruct((M, H), x.dtype),
        grid_spec=pltpu.PrefetchScalarGridSpec(
            num_scalar_prefetch=0,
            grid=(grid_m, grid_k),  # reduction (ffn) axis last
            in_specs=[
                pl.BlockSpec((tm, H), lambda i, k: (i, 0)),   # x row tile
                pl.BlockSpec((H, tf), lambda i, k: (0, k)),   # w1 chunk
                pl.BlockSpec((tf, H), lambda i, k: (k, 0)),   # w2 chunk
            ],
            out_specs=pl.BlockSpec((tm, H), lambda i, k: (i, 0)),
            scratch_shapes=[pltpu.VMEM((tm, H), jnp.float32)],
        ),
        compiler_params=pltpu.CompilerParams(
            # M axis parallel (shards across TCs on v7x); ffn axis is the
            # reduction -> arbitrary.
            dimension_semantics=("parallel", "arbitrary"),
            # Above default scoped limit; tiles are chosen for a 48 MiB
            # working set so this stays within physical VMEM on all chips.
            vmem_limit_bytes=64 * 1024 * 1024,
        ),
        cost_estimate=cost,
    )(x2d, w1, w2)

    return out.reshape(B, S, H)


def falcon_mlp_reference(x, w1, w2):
    h = jnp.einsum("bsh,hf->bsf", x, w1)
    h = 0.5 * h * (1.0 + jax.lax.erf(h * _INV_SQRT2))
    return jnp.einsum("bsf,fh->bsh", h, w2)


if __name__ == "__main__":
    # Small, TPU-friendly shapes consistent with FalconMLP's forward:
    # hidden_size = 128, ffn = 4 * hidden = 512, batch = 2, seq = 8.
    B, S, H = 2, 8, 128
    F4 = 4 * H

    key = jax.random.PRNGKey(0)
    kx, k1, k2 = jax.random.split(key, 3)

    x = jax.random.normal(kx, (B, S, H), dtype=jnp.float32)
    # Deterministic init (initializer_range = 0.02, no bias).
    w1 = 0.02 * jax.random.normal(k1, (H, F4), dtype=jnp.float32)  # dense_h_to_4h.weight.T
    w2 = 0.02 * jax.random.normal(k2, (F4, H), dtype=jnp.float32)  # dense_4h_to_h.weight.T

    y = falcon_mlp(x, w1, w2)
    y = jax.block_until_ready(y)

    y_ref = falcon_mlp_reference(x, w1, w2)
    assert y.shape == (B, S, H)
    assert y.dtype == x.dtype
    assert jnp.allclose(y, y_ref, atol=1e-4, rtol=1e-4), "mismatch vs reference"

    print("KERNEL_OK")
</pallas_src>

<mosaic_0001>
module attributes {stable_mosaic.version = 11 : i64} {
  func.func @falcon_mlp_kernel(%arg0: i32, %arg1: i32, %arg2: memref<16x128xf32, #tpu.memory_space<vmem>>, %arg3: memref<128x512xf32, #tpu.memory_space<vmem>>, %arg4: memref<512x128xf32, #tpu.memory_space<vmem>>, %arg5: memref<16x128xf32, #tpu.memory_space<vmem>>, %arg6: memref<16x128xf32, #tpu.memory_space<vmem>>) attributes {dimension_semantics = [#tpu.dimension_semantics<parallel>, #tpu.dimension_semantics<arbitrary>], iteration_bounds = array<i64: 1, 1>, scalar_prefetch = 0 : i64, scratch_operands = 1 : i64, tpu.core_type = #tpu.core_type<tc>, window_params = [{transform_indices = @transform_0, window_bounds = array<i64: 16, 128>}, {transform_indices = @transform_1, window_bounds = array<i64: 128, 512>}, {transform_indices = @transform_2, window_bounds = array<i64: 512, 128>}, {transform_indices = @transform_3, window_bounds = array<i64: 16, 128>}]} {
    %c0_i32 = arith.constant 0 : i32
    %0 = arith.cmpi eq, %arg1, %c0_i32 : i32
    %1 = arith.extui %0 : i1 to i32
    %c0_i32_0 = arith.constant 0 : i32
    %2 = arith.cmpi ne, %1, %c0_i32_0 : i32
    scf.if %2 {
      %cst_16 = arith.constant 0.000000e+00 : f32
      %22 = vector.broadcast %cst_16 : f32 to vector<16x128xf32>
      %c0_17 = arith.constant 0 : index
      %c0_18 = arith.constant 0 : index
      %23 = vector.load %arg6[%c0_17, %c0_18] : memref<16x128xf32, #tpu.memory_space<vmem>>, vector<16x128xf32>
      tpu.vector_store %arg6[%c0_17, %c0_18], %22 {strides = array<i32>} : memref<16x128xf32, #tpu.memory_space<vmem>>, vector<16x128xf32>,
    } else {
    }
    %c0 = arith.constant 0 : index
    %c0_1 = arith.constant 0 : index
    %3 = vector.load %arg2[%c0, %c0_1] : memref<16x128xf32, #tpu.memory_space<vmem>>, vector<16x128xf32>
    %c0_2 = arith.constant 0 : index
    %c0_3 = arith.constant 0 : index
    %4 = vector.load %arg3[%c0_2, %c0_3] : memref<128x512xf32, #tpu.memory_space<vmem>>, vector<128x512xf32>
    %cst = arith.constant dense<0.000000e+00> : vector<16x512xf32>
    %5 = tpu.matmul %3, %4, %cst {dimension_numbers = #tpu.dot_dimension_numbers<[1], [0], [0], [1], [0, 0, 1, 1], [], []>} : vector<16x128xf32>, vector<128x512xf32>, vector<16x512xf32> -> vector<16x512xf32>
    %cst_4 = arith.constant 5.000000e-01 : f32
    %6 = vector.broadcast %cst_4 : f32 to vector<16x512xf32>
    %7 = arith.mulf %6, %5 : vector<16x512xf32>
    %cst_5 = arith.constant 0.707106769 : f32
    %8 = vector.broadcast %cst_5 : f32 to vector<16x512xf32>
    %9 = arith.mulf %5, %8 : vector<16x512xf32>
    %10 = math.erf %9 : vector<16x512xf32>
    %cst_6 = arith.constant 1.000000e+00 : f32
    %11 = vector.broadcast %cst_6 : f32 to vector<16x512xf32>
    %12 = arith.addf %11, %10 : vector<16x512xf32>
    %13 = arith.mulf %7, %12 : vector<16x512xf32>
    %c0_7 = arith.constant 0 : index
    %c0_8 = arith.constant 0 : index
    %14 = vector.load %arg6[%c0_7, %c0_8] : memref<16x128xf32, #tpu.memory_space<vmem>>, vector<16x128xf32>
    %c0_9 = arith.constant 0 : index
    %c0_10 = arith.constant 0 : index
    %15 = vector.load %arg4[%c0_9, %c0_10] : memref<512x128xf32, #tpu.memory_space<vmem>>, vector<512x128xf32>
    %cst_11 = arith.constant dense<0.000000e+00> : vector<16x128xf32>
    %16 = tpu.matmul %13, %15, %cst_11 {dimension_numbers = #tpu.dot_dimension_numbers<[1], [0], [0], [1], [0, 0, 1, 1], [], []>} : vector<16x512xf32>, vector<512x128xf32>, vector<16x128xf32> -> vector<16x128xf32>
    %17 = arith.addf %14, %16 : vector<16x128xf32>
    %c0_12 = arith.constant 0 : index
    %c0_13 = arith.constant 0 : index
    %18 = vector.load %arg6[%c0_12, %c0_13] : memref<16x128xf32, #tpu.memory_space<vmem>>, vector<16x128xf32>
    tpu.vector_store %arg6[%c0_12, %c0_13], %17 {strides = array<i32>} : memref<16x128xf32, #tpu.memory_space<vmem>>, vector<16x128xf32>,
    %c0_i32_14 = arith.constant 0 : i32
    %19 = arith.cmpi eq, %arg1, %c0_i32_14 : i32
    %20 = arith.extui %19 : i1 to i32
    %c0_i32_15 = arith.constant 0 : i32
    %21 = arith.cmpi ne, %20, %c0_i32_15 : i32
    scf.if %21 {
      %c0_16 = arith.constant 0 : index
      %c0_17 = arith.constant 0 : index
      %22 = vector.load %arg6[%c0_16, %c0_17] : memref<16x128xf32, #tpu.memory_space<vmem>>, vector<16x128xf32>
      %c0_18 = arith.constant 0 : index
      %c0_19 = arith.constant 0 : index
      %23 = vector.load %arg5[%c0_18, %c0_19] : memref<16x128xf32, #tpu.memory_space<vmem>>, vector<16x128xf32>
      tpu.vector_store %arg5[%c0_18, %c0_19], %22 {strides = array<i32>} : memref<16x128xf32, #tpu.memory_space<vmem>>, vector<16x128xf32>,
    } else {
    }
    return
  }
  func.func @transform_0(%arg0: i32, %arg1: i32) -> (i32, i32) {
    %c0_i32 = arith.constant 0 : i32
    %c0_i32_0 = arith.constant 0 : i32
    return %arg0, %c0_i32 : i32, i32
  }
  func.func @transform_1(%arg0: i32, %arg1: i32) -> (i32, i32) {
    %c0_i32 = arith.constant 0 : i32
    %c0_i32_0 = arith.constant 0 : i32
    return %c0_i32, %arg1 : i32, i32
  }
  func.func @transform_2(%arg0: i32, %arg1: i32) -> (i32, i32) {
    %c0_i32 = arith.constant 0 : i32
    %c0_i32_0 = arith.constant 0 : i32
    return %arg1, %c0_i32 : i32, i32
  }
  func.func @transform_3(%arg0: i32, %arg1: i32) -> (i32, i32) {
    %c0_i32 = arith.constant 0 : i32
    %c0_i32_0 = arith.constant 0 : i32
    return %arg0, %c0_i32 : i32, i32
  }
}

</mosaic_0001>

<bundles_post_ra>
// kernel: falcon_mlp.1
= control target key start
LH: loop header
LB: loop body
LE: loop exit
PB: predicated region body
PF: predicated region fallthrough
CT: control target
= control target key end

     0   :  { %8 = vsyncpa [#allocation4], 0  ;;  %s1249_s0 = inlined_call_operand.hbm [shape: f32[16,128], index: 0, kind: input, shape index: {}]   ;;  %s1250_s1 = inlined_call_operand.hbm [shape: f32[128,512], index: 1, kind: input, shape index: {}]   ;;  %s1251_s2 = inlined_call_operand.hbm [shape: f32[512,128], index: 2, kind: input, shape index: {}]   ;;  %s1252_s3 = inlined_call_operand.hbm [shape: f32[16,128], index: 3, kind: output, shape index: {}]  }
   0x1   :  { %9 = vsyncpa [#allocation7], 0  ;;  %s28_s14 = sshll.u32 %s1250_s1, 4  ;;  %s29_s14 = int_to_ptr.hbm [resolvable:$true] %s28_s14 }
   0x2   :  { %10 = vsyncpa [#allocation5], 0  ;;  %s901_s15 = smov [#allocation6]   ;;  %s15_s19 = sshll.u32 %s1249_s0, 4  ;;  %s16_s19 = int_to_ptr.hbm [resolvable:$true] %s15_s19 }
   0x3   :  { %s30_s16 = sshll.u32 %s901_s15, 4  ;;  %s902_s20 = smov 512   ;;  %s31_s16 = int_to_ptr.vmem [resolvable:$true] %s30_s16 }
   0x4   :  { %s903_s21 = smov 32   ;;  %s904_s22 = smov [#allocation3]  }
   0x5   :  { %36 = dma.hbm_to_vmem [thread:$0]  %s29_s14, 8192, %s31_s16, [#allocation7], %s902_s20, %s902_s20, %s903_s21  }
   0x6   :  { %s17_s23 = sshll.u32 %s904_s22, 4  ;;  %s905_s24 = smov 128   ;;  %s18_s23 = int_to_ptr.vmem [resolvable:$true] %s17_s23 }
   0x7   :  { %s906_s25 = smov 8   ;;  %s41_s27 = sshll.u32 %s1251_s2, 4  ;;  %s42_s27 = int_to_ptr.hbm [resolvable:$true] %s41_s27 }
   0x8   :  { %23 = dma.hbm_to_vmem [thread:$0]  %s16_s19, 256, %s18_s23, [#allocation4], %s905_s24, %s905_s24, %s906_s25  }
   0x9   :  { %s907_s28 = smov [#allocation8]  }
   0xa   :  { %s43_s0 = sshll.u32 %s907_s28, 4  ;;  %s44_s0 = int_to_ptr.vmem [resolvable:$true] %s43_s0 }
   0xb   :  { %49 = dma.hbm_to_vmem [thread:$0]  %s42_s27, 8192, %s44_s0, [#allocation7], %s905_s24, %s905_s24, %s906_s25  }
   0xc   :  { %895 = dma.done.wait [#allocation4], 256  }
   0xd   :  { %896 = vsyncadd [#allocation4], 4294967040 }
   0xe   :  { %897 = dma.done.wait [#allocation7], 16384  }
   0xf   :  { %898 = vsyncadd [#allocation7], 4294950912  ;;  %v130_v0 = vld [vmem:[#allocation6 + $0x1e0] sm:$0xff]  ;;  %v131_v1 = vld [vmem:[#allocation6 + $0x1e8] sm:$0xff]  ;;  %s908_s2 = smov [#allocation9]   ;;  %s753_s5 = sshll.u32 %s1252_s3, 4  ;;  %s754_s5 = int_to_ptr.hbm [resolvable:$true] %s753_s5 }
  0x10   :  { %v132_v2 = vld [vmem:[#allocation6 + $0x1f0] sm:$0xff]  ;;  %134 = vmatpush.msra.mxu0 %v130_v0  ;;  %157 = vmatpush.msra.mxu1 %v131_v1  ;;  %v133_v3 = vld [vmem:[#allocation6 + $0x1f8] sm:$0xff]  ;;  %v126_v4 = vld [vmem:[#allocation6 + $0x1c0] sm:$0xff]  ;;  %s751_s29 = sshll.u32 %s908_s2, 4  ;;  %s752_s29 = int_to_ptr.vmem [resolvable:$true] %s751_s29 }
  0x11   :  { %v127_v5 = vld [vmem:[#allocation6 + $0x1c8] sm:$0xff]  ;;  %180 = vmatpush.msra.mxu2 %v132_v2  ;;  %203 = vmatpush.msra.mxu3 %v133_v3  ;;  %v128_v6 = vld [vmem:[#allocation6 + $0x1d0] sm:$0xff]  ;;  %v129_v7 = vld [vmem:[#allocation6 + $0x1d8] sm:$0xff] }
  0x12   :  { %v122_v8 = vld [vmem:[#allocation6 + $0x1a0] sm:$0xff]  ;;  %135 = vmatpush.msra.mxu0 %v126_v4  ;;  %158 = vmatpush.msra.mxu1 %v127_v5  ;;  %v123_v9 = vld [vmem:[#allocation6 + $0x1a8] sm:$0xff]  ;;  %v124_v10 = vld [vmem:[#allocation6 + $0x1b0] sm:$0xff] }
  0x13   :  { %v125_v11 = vld [vmem:[#allocation6 + $0x1b8] sm:$0xff]  ;;  %181 = vmatpush.msra.mxu2 %v128_v6  ;;  %204 = vmatpush.msra.mxu3 %v129_v7  ;;  %v118_v12 = vld [vmem:[#allocation6 + $0x180] sm:$0xff]  ;;  %v119_v13 = vld [vmem:[#allocation6 + $0x188] sm:$0xff] }
  0x14   :  { %136 = vmatpush.msra.mxu0 %v122_v8  ;;  %159 = vmatpush.msra.mxu1 %v123_v9  ;;  %v120_v14 = vld [vmem:[#allocation6 + $0x190] sm:$0xff]  ;;  %v121_v15 = vld [vmem:[#allocation6 + $0x198] sm:$0xff]  ;;  %v114_v16 = vld [vmem:[#allocation6 + $0x160] sm:$0xff] }
  0x15   :  { %182 = vmatpush.msra.mxu2 %v124_v10  ;;  %205 = vmatpush.msra.mxu3 %v125_v11  ;;  %v115_v17 = vld [vmem:[#allocation6 + $0x168] sm:$0xff]  ;;  %v116_v18 = vld [vmem:[#allocation6 + $0x170] sm:$0xff]  ;;  %v117_v19 = vld [vmem:[#allocation6 + $0x178] sm:$0xff] }
  0x16   :  { %137 = vmatpush.msra.mxu0 %v118_v12  ;;  %160 = vmatpush.msra.mxu1 %v119_v13  ;;  %v110_v20 = vld [vmem:[#allocation6 + $0x140] sm:$0xff]  ;;  %v111_v21 = vld [vmem:[#allocation6 + $0x148] sm:$0xff]  ;;  %v112_v22 = vld [vmem:[#allocation6 + $0x150] sm:$0xff] }
  0x17   :  { %183 = vmatpush.msra.mxu2 %v120_v14  ;;  %206 = vmatpush.msra.mxu3 %v121_v15  ;;  %v113_v23 = vld [vmem:[#allocation6 + $0x158] sm:$0xff]  ;;  %v106_v24 = vld [vmem:[#allocation6 + $0x120] sm:$0xff]  ;;  %v107_v25 = vld [vmem:[#allocation6 + $0x128] sm:$0xff] }
  0x18   :  { %138 = vmatpush.msra.mxu0 %v114_v16  ;;  %161 = vmatpush.msra.mxu1 %v115_v17  ;;  %v108_v26 = vld [vmem:[#allocation6 + $0x130] sm:$0xff]  ;;  %v109_v27 = vld [vmem:[#allocation6 + $0x138] sm:$0xff]  ;;  %v102_v28 = vld [vmem:[#allocation6 + $0x100] sm:$0xff] }
  0x19   :  { %184 = vmatpush.msra.mxu2 %v116_v18  ;;  %207 = vmatpush.msra.mxu3 %v117_v19  ;;  %v103_v29 = vld [vmem:[#allocation6 + $0x108] sm:$0xff]  ;;  %v104_v30 = vld [vmem:[#allocation6 + $0x110] sm:$0xff]  ;;  %v105_v31 = vld [vmem:[#allocation6 + $0x118] sm:$0xff] }
  0x1a   :  { %139 = vmatpush.msra.mxu0 %v110_v20  ;;  %162 = vmatpush.msra.mxu1 %v111_v21  ;;  %v98_v32 = vld [vmem:[#allocation6 + $0xe0] sm:$0xff]  ;;  %v99_v33 = vld [vmem:[#allocation6 + $0xe8] sm:$0xff]  ;;  %v100_v34 = vld [vmem:[#allocation6 + $0xf0] sm:$0xff] }
  0x1b   :  { %185 = vmatpush.msra.mxu2 %v112_v22  ;;  %208 = vmatpush.msra.mxu3 %v113_v23  ;;  %v101_v35 = vld [vmem:[#allocation6 + $0xf8] sm:$0xff]  ;;  %v94_v36 = vld [vmem:[#allocation6 + $0xc0] sm:$0xff]  ;;  %v95_v37 = vld [vmem:[#allocation6 + $0xc8] sm:$0xff] }
  0x1c   :  { %140 = vmatpush.msra.mxu0 %v106_v24  ;;  %163 = vmatpush.msra.mxu1 %v107_v25  ;;  %v96_v38 = vld [vmem:[#allocation6 + $0xd0] sm:$0xff]  ;;  %v97_v39 = vld [vmem:[#allocation6 + $0xd8] sm:$0xff]  ;;  %v90_v40 = vld [vmem:[#allocation6 + $0xa0] sm:$0xff] }
  0x1d   :  { %186 = vmatpush.msra.mxu2 %v108_v26  ;;  %209 = vmatpush.msra.mxu3 %v109_v27  ;;  %v91_v41 = vld [vmem:[#allocation6 + $0xa8] sm:$0xff]  ;;  %v92_v42 = vld [vmem:[#allocation6 + $0xb0] sm:$0xff]  ;;  %v93_v43 = vld [vmem:[#allocation6 + $0xb8] sm:$0xff] }
  0x1e   :  { %141 = vmatpush.msra.mxu0 %v102_v28  ;;  %164 = vmatpush.msra.mxu1 %v103_v29  ;;  %v86_v44 = vld [vmem:[#allocation6 + $0x80] sm:$0xff]  ;;  %v87_v45 = vld [vmem:[#allocation6 + $0x88] sm:$0xff]  ;;  %v88_v46 = vld [vmem:[#allocation6 + $0x90] sm:$0xff] }
  0x1f   :  { %187 = vmatpush.msra.mxu2 %v104_v30  ;;  %210 = vmatpush.msra.mxu3 %v105_v31  ;;  %v89_v47 = vld [vmem:[#allocation6 + $0x98] sm:$0xff]  ;;  %v82_v48 = vld [vmem:[#allocation6 + $0x60] sm:$0xff]  ;;  %v83_v49 = vld [vmem:[#allocation6 + $0x68] sm:$0xff] }
  0x20   :  { %142 = vmatpush.msra.mxu0 %v98_v32  ;;  %165 = vmatpush.msra.mxu1 %v99_v33  ;;  %v84_v50 = vld [vmem:[#allocation6 + $0x70] sm:$0xff]  ;;  %v85_v51 = vld [vmem:[#allocation6 + $0x78] sm:$0xff]  ;;  %v78_v52 = vld [vmem:[#allocation6 + $0x40] sm:$0xff] }
  0x21   :  { %188 = vmatpush.msra.mxu2 %v100_v34  ;;  %211 = vmatpush.msra.mxu3 %v101_v35  ;;  %v79_v53 = vld [vmem:[#allocation6 + $0x48] sm:$0xff]  ;;  %v80_v54 = vld [vmem:[#allocation6 + $0x50] sm:$0xff]  ;;  %v81_v55 = vld [vmem:[#allocation6 + $0x58] sm:$0xff] }
  0x22   :  { %143 = vmatpush.msra.mxu0 %v94_v36  ;;  %166 = vmatpush.msra.mxu1 %v95_v37  ;;  %v74_v56 = vld [vmem:[#allocation6 + $0x20] sm:$0xff]  ;;  %v75_v57 = vld [vmem:[#allocation6 + $0x28] sm:$0xff]  ;;  %v76_v58 = vld [vmem:[#allocation6 + $0x30] sm:$0xff] }
  0x23   :  { %189 = vmatpush.msra.mxu2 %v96_v38  ;;  %212 = vmatpush.msra.mxu3 %v97_v39  ;;  %v77_v59 = vld [vmem:[#allocation6 + $0x38] sm:$0xff]  ;;  %v70_v60 = vld [vmem:[#allocation6] sm:$0xff]  ;;  %v71_v61 = vld [vmem:[#allocation6 + $0x8] sm:$0xff] }
  0x24   :  { %144 = vmatpush.msra.mxu0 %v90_v40  ;;  %167 = vmatpush.msra.mxu1 %v91_v41  ;;  %v72_v62 = vld [vmem:[#allocation6 + $0x10] sm:$0xff]  ;;  %v73_v63 = vld [vmem:[#allocation6 + $0x18] sm:$0xff] }
  0x25   :  { %190 = vmatpush.msra.mxu2 %v92_v42  ;;  %213 = vmatpush.msra.mxu3 %v93_v43  ;;  %v68_v0 = vld [vmem:[#allocation3] sm:$0xff]  ;;  %v69_v1 = vld [vmem:[#allocation3 + $0x8] sm:$0xff] }
  0x26   :  { %145 = vmatpush.msra.mxu0 %v86_v44  ;;  %168 = vmatpush.msra.mxu1 %v87_v45 }
  0x27   :  { %191 = vmatpush.msra.mxu2 %v88_v46  ;;  %214 = vmatpush.msra.mxu3 %v89_v47 }
  0x28   :  { %146 = vmatpush.msra.mxu0 %v82_v48  ;;  %169 = vmatpush.msra.mxu1 %v83_v49 }
  0x29   :  { %192 = vmatpush.msra.mxu2 %v84_v50  ;;  %215 = vmatpush.msra.mxu3 %v85_v51 }
  0x2a   :  { %147 = vmatpush.msra.mxu0 %v78_v52  ;;  %170 = vmatpush.msra.mxu1 %v79_v53 }
  0x2b   :  { %193 = vmatpush.msra.mxu2 %v80_v54  ;;  %216 = vmatpush.msra.mxu3 %v81_v55 }
  0x2c   :  { %148 = vmatpush.msra.mxu0 %v74_v56  ;;  %171 = vmatpush.msra.mxu1 %v75_v57 }
  0x2d   :  { %194 = vmatpush.msra.mxu2 %v76_v58  ;;  %217 = vmatpush.msra.mxu3 %v77_v59 }
  0x2e   :  { %149 = vmatpush.msra.mxu0 %v70_v60  ;;  %172 = vmatpush.msra.mxu1 %v71_v61 }
  0x2f   :  { %195 = vmatpush.msra.mxu2 %v72_v62  ;;  %218 = vmatpush.msra.mxu3 %v73_v63 }
  0x30   :  { %150 = vmatmul.f32.vlgmr.msra.gmra.mxu0 %v68_v0  ;;  %173 = vmatmul.f32.vlgmr.msra.gmra.mxu1 %v68_v0 }
  0x31   :  { %196 = vmatmul.f32.vlgmr.msra.gmra.mxu2 %v68_v0  ;;  %219 = vmatmul.f32.vlgmr.msra.gmra.mxu3 %v68_v0  ;;  %v595_v0 = vld [vmem:[#allocation8 + $0x78] sm:$0xff] }
  0x32   :  { %644 = vmatpush.msrb.mxu0 %v595_v0  ;;  %v641_v0 = vld [vmem:[#allocation8 + $0x1e8] sm:$0xff] }
  0x38   :  { %153 = vmatmul.f32.gmra.mxu0 %v69_v1  ;;  %176 = vmatmul.f32.gmra.mxu1 %v69_v1 }
  0x39   :  { %199 = vmatmul.f32.gmra.mxu2 %v69_v1  ;;  %222 = vmatmul.f32.gmra.mxu3 %v69_v1  ;;  %v611_v1 = vld [vmem:[#allocation8 + $0xf8] sm:$0xff] }
  0x3a   :  { %667 = vmatpush.msrb.mxu1 %v611_v1 }
  0xad   :  { %v944_v2 = vpop.f32.mrf.mxu0  ;;  %v946_v3 = vpop.f32.mrf.mxu1 }
  0xae   :  { %v949_v4 = vmul.f32 0.70710677, %v944_v2  ;;  %v952_v5 = vmul.f32 0.70710677, %v946_v3 }
  0xb0   :  { %v242_v6 = vmul.f32 %v949_v4, %v949_v4  ;;  %v282_v7 = vmul.f32 %v952_v5, %v952_v5 }
  0xb2   :  { %v958_v8 = vmin.f32 %v242_v6, 16.0  ;;  %v960_v9 = vmin.f32 %v282_v7, 16.0 }
  0xb4   :  { %v244_v10 = vmul.f32 2.1237322e-06, %v958_v8  ;;  %v255_v11 = vmul.f32 3.8918573e-05, %v958_v8  ;;  %v284_v12 = vmul.f32 2.1237322e-06, %v960_v9  ;;  %v965_v13 = vpop.f32.mrf.mxu2  ;;  %v967_v14 = vpop.f32.mrf.mxu3 }
  0xb5   :  { %v295_v15 = vmul.f32 3.8918573e-05, %v960_v9  ;;  %v971_v16 = vmul.f32 0.70710677, %v965_v13  ;;  %v976_v22 = vmul.f32 0.70710677, %v967_v14  ;;  %v1002_v59 = vpop.f32.mrf.mxu0 }
  0xb6   :  { %v245_v17 = vadd.f32 0.00028619796, %v244_v10  ;;  %v256_v18 = vadd.f32 0.001143296, %v255_v11  ;;  %v285_v19 = vadd.f32 0.00028619796, %v284_v12 }
  0xb7   :  { %v296_v20 = vadd.f32 0.001143296, %v295_v15  ;;  %v322_v21 = vmul.f32 %v971_v16, %v971_v16  ;;  %v362_v28 = vmul.f32 %v976_v22, %v976_v22  ;;  %v594_v11 = vld [vmem:[#allocation8 + $0x70] sm:$0xff] }
  0xb8   :  { %v246_v23 = vmul.f32 %v245_v17, %v958_v8  ;;  %v257_v24 = vmul.f32 %v256_v18, %v958_v8  ;;  %v286_v25 = vmul.f32 %v285_v19, %v960_v9  ;;  %v610_v12 = vld [vmem:[#allocation8 + $0xf0] sm:$0xff]  ;;  %v1011_v19 = vmul.f32 0.70710677, %v1002_v59  ;;  %645 = vmatpush.msrb.mxu0 %v594_v11  ;;  %v589_v11 = vld [vmem:[#allocation8 + $0x48] sm:$0xff] }
  0xb9   :  { %v297_v26 = vmul.f32 %v296_v20, %v960_v9  ;;  %v982_v27 = vmin.f32 %v322_v21, 16.0  ;;  %v991_v38 = vmin.f32 %v362_v28, 16.0  ;;  %668 = vmatpush.msrb.mxu1 %v610_v12  ;;  %v609_v28 = vld [vmem:[#allocation8 + $0xe8] sm:$0xff] }
  0xba   :  { %v247_v29 = vadd.f32 0.0036580483, %v246_v23  ;;  %v258_v30 = vadd.f32 0.014752088, %v257_v24  ;;  %v287_v31 = vadd.f32 0.0036580483, %v286_v25 }
  0xbb   :  { %v298_v32 = vadd.f32 0.014752088, %v297_v26  ;;  %v324_v33 = vmul.f32 2.1237322e-06, %v982_v27  ;;  %v335_v34 = vmul.f32 3.8918573e-05, %v982_v27  ;;  %669 = vmatpush.msrb.mxu1 %v609_v28 }
  0xbc   :  { %v248_v35 = vmul.f32 %v247_v29, %v958_v8  ;;  %v259_v36 = vmul.f32 %v258_v30, %v958_v8  ;;  %v288_v37 = vmul.f32 %v287_v31, %v960_v9  ;;  %v364_v48 = vmul.f32 2.1237322e-06, %v991_v38  ;;  %v593_v24 = vld [vmem:[#allocation8 + $0x68] sm:$0xff]  ;;  %v592_v30 = vld [vmem:[#allocation8 + $0x60] sm:$0xff] }
  0xbd   :  { %v299_v39 = vmul.f32 %v298_v32, %v960_v9  ;;  %v325_v40 = vadd.f32 0.00028619796, %v324_v33  ;;  %v336_v41 = vadd.f32 0.001143296, %v335_v34  ;;  %v375_v52 = vmul.f32 3.8918573e-05, %v991_v38  ;;  %646 = vmatpush.msrb.mxu0 %v593_v24 }
  0xbe   :  { %v249_v42 = vadd.f32 0.05243302, %v248_v35  ;;  %v260_v43 = vadd.f32 0.112945676, %v259_v36  ;;  %v289_v44 = vadd.f32 0.05243302, %v288_v37  ;;  %v402_v34 = vmul.f32 %v1011_v19, %v1011_v19 }
  0xbf   :  { %v300_v45 = vadd.f32 0.112945676, %v299_v39  ;;  %v326_v46 = vmul.f32 %v325_v40, %v982_v27  ;;  %v337_v47 = vmul.f32 %v336_v41, %v982_v27  ;;  %v365_v56 = vadd.f32 0.00028619796, %v364_v48  ;;  %v608_v31 = vld [vmem:[#allocation8 + $0xe0] sm:$0xff]  ;;  %v627_v32 = vld [vmem:[#allocation8 + $0x178] sm:$0xff]  ;;  %647 = vmatpush.msrb.mxu0 %v592_v30 }
  0xc0   :  { %v250_v49 = vmul.f32 %v249_v42, %v958_v8  ;;  %v261_v50 = vmul.f32 %v260_v43, %v958_v8  ;;  %v290_v51 = vmul.f32 %v289_v44, %v960_v9  ;;  %v376_v10 = vadd.f32 0.001143296, %v375_v52  ;;  %690 = vmatpush.msrb.mxu2 %v627_v32  ;;  %v643_v35 = vld [vmem:[#allocation8 + $0x1f8] sm:$0xff]  ;;  %670 = vmatpush.msrb.mxu1 %v608_v31  ;;  %v1027_v42 = vpop.f32.mrf.mxu1  ;;  %v626_v48 = vld [vmem:[#allocation8 + $0x170] sm:$0xff]  ;;  %v605_v12 = vld [vmem:[#allocation8 + $0xc8] sm:$0xff] }
  0xc1   :  { %v301_v53 = vmul.f32 %v300_v45, %v960_v9  ;;  %v327_v54 = vadd.f32 0.0036580483, %v326_v46  ;;  %v338_v55 = vadd.f32 0.014752088, %v337_v47  ;;  %v366_v63 = vmul.f32 %v365_v56, %v991_v38  ;;  %713 = vmatpush.msrb.mxu3 %v643_v35  ;;  %v591_v43 = vld [vmem:[#allocation8 + $0x58] sm:$0xff]  ;;  %v588_v28 = vld [vmem:[#allocation8 + $0x40] sm:$0xff] }
  0xc2   :  { %v251_v57 = vadd.f32 0.18741608, %v250_v49  ;;  %v262_v58 = vadd.f32 0.4994258, %v261_v50  ;;  %v291_v7 = vadd.f32 0.18741608, %v290_v51  ;;  %v377_v29 = vmul.f32 %v376_v10, %v991_v38  ;;  %648 = vmatpush.msrb.mxu0 %v591_v43  ;;  %691 = vmatpush.msrb.mxu2 %v626_v48 }
  0xc3   :  { %v302_v60 = vadd.f32 0.4994258, %v301_v53  ;;  %v328_v61 = vmul.f32 %v327_v54, %v982_v27  ;;  %v339_v62 = vmul.f32 %v338_v55, %v982_v27  ;;  %v367_v23 = vadd.f32 0.0036580483, %v366_v63  ;;  %v607_v44 = vld [vmem:[#allocation8 + $0xd8] sm:$0xff]  ;;  %v642_v49 = vld [vmem:[#allocation8 + $0x1f0] sm:$0xff] }
  0xc4   :  { %v263_v6 = vmul.f32 %v262_v58, %v958_v8  ;;  %v252_v15 = vmul.f32 %v251_v57, %v958_v8  ;;  %v292_v8 = vmul.f32 %v291_v7, %v960_v9  ;;  %v378_v41 = vadd.f32 0.014752088, %v377_v29  ;;  %671 = vmatpush.msrb.mxu1 %v607_v44  ;;  %714 = vmatpush.msrb.mxu3 %v642_v49  ;;  %v625_v63 = vld [vmem:[#allocation8 + $0x168] sm:$0xff]  ;;  %v623_v29 = vld [vmem:[#allocation8 + $0x158] sm:$0xff]  ;;  %v638_v44 = vld [vmem:[#allocation8 + $0x1d0] sm:$0xff] }
  0xc5   :  { %v303_v17 = vmul.f32 %v302_v60, %v960_v9  ;;  %v340_v18 = vadd.f32 0.112945676, %v339_v62  ;;  %v329_v21 = vadd.f32 0.05243302, %v328_v61  ;;  %v368_v37 = vmul.f32 %v367_v23, %v991_v38  ;;  %v1053_v61 = vpop.f32.mrf.mxu2  ;;  %v606_v62 = vld [vmem:[#allocation8 + $0xd0] sm:$0xff]  ;;  %692 = vmatpush.msrb.mxu2 %v625_v63  ;;  %v603_v35 = vld [vmem:[#allocation8 + $0xb8] sm:$0xff] }
  0xc6   :  { %v1013_v20 = vadd.f32 1.0, %v263_v6  ;;  %v253_v33 = vadd.f32 1.1283791, %v252_v15  ;;  %v293_v40 = vadd.f32 1.1283791, %v292_v8  ;;  %v1033_v47 = vmin.f32 %v402_v34, 16.0  ;;  %672 = vmatpush.msrb.mxu1 %v606_v62  ;;  %715 = vmatpush.msrb.mxu3 %v641_v0 }
  0xc7   :  { %v1015_v25 = vadd.f32 1.0, %v303_v17  ;;  %v341_v26 = vmul.f32 %v340_v18, %v982_v27  ;;  %v330_v36 = vmul.f32 %v329_v21, %v982_v27  ;;  %v369_v53 = vadd.f32 0.05243302, %v368_v37  ;;  %v640_v18 = vld [vmem:[#allocation8 + $0x1e0] sm:$0xff]  ;;  %v587_v34 = vld [vmem:[#allocation8 + $0x38] sm:$0xff]  ;;  %v602_v48 = vld [vmem:[#allocation8 + $0xb0] sm:$0xff] }
  0xc8   :  { %783 = vrcp.f32 %v1013_v20  ;;  %v274_v9 = vand.u32 2147483647, %v1013_v20  ;;  %v1030_v45 = vmul.f32 %v253_v33, %v949_v4  ;;  %v276_v51 = vand.u32 2147483648, %v1013_v20  ;;  %v590_v4 = vld [vmem:[#allocation8 + $0x50] sm:$0xff]  ;;  %673 = vmatpush.msrb.mxu1 %v605_v12  ;;  %v604_v8 = vld [vmem:[#allocation8 + $0xc0] sm:$0xff]  ;;  %716 = vmatpush.msrb.mxu3 %v640_v18  ;;  %v601_v12 = vld [vmem:[#allocation8 + $0xa8] sm:$0xff] }
  0xc9   :  { %785 = vrcp.f32 %v1015_v25  ;;  %v342_v39 = vadd.f32 0.4994258, %v341_v26  ;;  %v331_v52 = vadd.f32 0.18741608, %v330_v36  ;;  %v379_v54 = vmul.f32 %v378_v41, %v991_v38  ;;  %649 = vmatpush.msrb.mxu0 %v590_v4  ;;  %v637_v4 = vld [vmem:[#allocation8 + $0x1c8] sm:$0xff]  ;;  %v636_v18 = vld [vmem:[#allocation8 + $0x1c0] sm:$0xff] }
  0xca   :  { %vm270_vm0 = vweird.f32 %v1013_v20  ;;  %vm1044_vm1 = vcmp.eq.f32.partialorder %v274_v9, 8.507059e+37  ;;  %v1051_v60 = vmul.f32 0.70710677, %v1027_v42  ;;  %v1056_v1 = vmul.f32 %v293_v40, %v952_v5  ;;  %v624_v5 = vld [vmem:[#allocation8 + $0x160] sm:$0xff]  ;;  %674 = vmatpush.msrb.mxu1 %v604_v8  ;;  %v622_v40 = vld [vmem:[#allocation8 + $0x150] sm:$0xff]  ;;  %v619_v8 = vld [vmem:[#allocation8 + $0x138] sm:$0xff] }
  0xcb   :  { %v343_v46 = vmul.f32 %v342_v39, %v982_v27  ;;  %v314_v7 = vand.u32 2147483647, %v1015_v25  ;;  %v380_v10 = vadd.f32 0.112945676, %v379_v54  ;;  %v316_v17 = vand.u32 2147483648, %v1015_v25  ;;  %650 = vmatpush.msrb.mxu0 %v589_v11  ;;  %693 = vmatpush.msrb.mxu2 %v624_v5  ;;  %v621_v54 = vld [vmem:[#allocation8 + $0x148] sm:$0xff]  ;;  %v1112_v11 = vpop.f32.mrf.mxu3 }
  0xcc   :  { %v332_v23 = vmul.f32 %v331_v52, %v982_v27  ;;  %v1067_v26 = vmul.f32 0.70710677, %v1053_v61  ;;  %v277_v31 = vor.u32 1.1754944e-38, %v276_v51  ;;  %v370_v32 = vmul.f32 %v369_v53, %v991_v38  ;;  %v639_v27 = vld [vmem:[#allocation8 + $0x1d8] sm:$0xff]  ;;  %675 = vmatpush.msrb.mxu1 %v603_v35  ;;  %v620_v5 = vld [vmem:[#allocation8 + $0x140] sm:$0xff]  ;;  %v618_v36 = vld [vmem:[#allocation8 + $0x130] sm:$0xff] }
  0xcd   :  { %v1048_v58 = vadd.f32 1.0, %v343_v46  ;;  %v381_v24 = vmul.f32 %v380_v10, %v991_v38  ;;  %v442_v33 = vmul.f32 %v1051_v60, %v1051_v60  ;;  %651 = vmatpush.msrb.mxu0 %v588_v28  ;;  %vm1083_vm5 = vcmp.eq.f32.partialorder %v314_v7, 8.507059e+37  ;;  %694 = vmatpush.msrb.mxu2 %v623_v29  ;;  %v586_v46 = vld [vmem:[#allocation8 + $0x30] sm:$0xff]  ;;  %v599_v35 = vld [vmem:[#allocation8 + $0x98] sm:$0xff]  ;;  %v597_v0 = vld [vmem:[#allocation8 + $0x88] sm:$0xff] }
  0xce   :  { %v1035_v50 = vpop.eup %783  ;;  %vm310_vm6 = vweird.f32 %v1015_v25  ;;  %v404_v43 = vmul.f32 2.1237322e-06, %v1033_v47  ;;  %717 = vmatpush.msrb.mxu3 %v639_v27  ;;  %v1091_v51 = vadd.f32 1.1283791, %v332_v23  ;;  %v482_v53 = vmul.f32 %v1067_v26, %v1067_v26  ;;  %676 = vmatpush.msrb.mxu1 %v602_v48 }
  0xcf   :  { %v1039_v55 = vpop.eup %785  ;;  %v266_v56 = vmul.f32 %v1035_v50, %v1013_v20  ;;  %vm271_vm2 = vweird.f32 %v1035_v50  ;;  %787 = vrcp.f32 %v1048_v58  ;;  %v382_v39 = vadd.f32 0.4994258, %v381_v24  ;;  %652 = vmatpush.msrb.mxu0 %v587_v34  ;;  %695 = vmatpush.msrb.mxu2 %v622_v40  ;;  %v583_v34 = vld [vmem:[#allocation8 + $0x18] sm:$0xff]  ;;  %v582_v40 = vld [vmem:[#allocation8 + $0x10] sm:$0xff] }
  0xd0   :  { %v306_v6 = vmul.f32 %v1039_v55, %v1015_v25  ;;  %vm1077_vm3 = vmor %vm270_vm0, %vm271_vm2  ;;  %vm311_vm4 = vweird.f32 %v1039_v55  ;;  %v317_v20 = vor.u32 1.1754944e-38, %v316_v17  ;;  %v371_v7 = vadd.f32 0.18741608, %v370_v32  ;;  %718 = vmatpush.msrb.mxu3 %v638_v44  ;;  %677 = vmatpush.msrb.mxu1 %v601_v12  ;;  %v598_v44 = vld [vmem:[#allocation8 + $0x90] sm:$0xff] }
  0xd1   :  { %v267_v15 = vsub.f32 1.0, %v266_v56  ;;  %v383_v52 = vmul.f32 %v382_v39, %v991_v38  ;;  %v585_v56 = vld [vmem:[#allocation8 + $0x28] sm:$0xff]  ;;  %vm1105_vm7 = vmor %vm310_vm6, %vm311_vm4  ;;  %v1110_v10 = vmin.f32 %v442_v33, 16.0  ;;  %653 = vmatpush.msrb.mxu0 %v586_v46  ;;  %v356_v17 = vand.u32 2147483648, %v1048_v58  ;;  %696 = vmatpush.msrb.mxu2 %v621_v54  ;;  %v634_v39 = vld [vmem:[#allocation8 + $0x1b0] sm:$0xff] }
  0xd2   :  { %v307_v21 = vsub.f32 1.0, %v306_v6  ;;  %v354_v6 = vand.u32 2147483647, %v1048_v58  ;;  %v405_v28 = vadd.f32 0.00028619796, %v404_v43  ;;  %719 = vmatpush.msrb.mxu3 %v637_v4  ;;  %v372_v9 = vmul.f32 %v371_v7, %v991_v38  ;;  %v617_v46 = vld [vmem:[#allocation8 + $0x128] sm:$0xff] }
  0xd3   :  { %v268_v30 = vmul.f32 %v1035_v50, %v267_v15  ;;  %v1125_v24 = vadd.f32 1.0, %v383_v52  ;;  %654 = vmatpush.msrb.mxu0 %v585_v56  ;;  %v1131_v32 = vmul.f32 0.70710677, %v1112_v11  ;;  %697 = vmatpush.msrb.mxu2 %v620_v5  ;;  %v444_v27 = vmul.f32 2.1237322e-06, %v1110_v10  ;;  %v633_v52 = vld [vmem:[#allocation8 + $0x1a8] sm:$0xff] }
  0xd4   :  { %v308_v37 = vmul.f32 %v1039_v55, %v307_v21  ;;  %v584_v21 = vld [vmem:[#allocation8 + $0x20] sm:$0xff]  ;;  %720 = vmatpush.msrb.mxu3 %v636_v18  ;;  %v406_v43 = vmul.f32 %v405_v28, %v1033_v47  ;;  %vm350_vm9 = vweird.f32 %v1048_v58  ;;  %v357_v4 = vor.u32 1.1754944e-38, %v356_v17  ;;  %v631_v28 = vld [vmem:[#allocation8 + $0x198] sm:$0xff] }
  0xd5   :  { %v269_v41 = vadd.f32 %v1035_v50, %v268_v30  ;;  %v1096_v62 = vpop.eup %787  ;;  %789 = vrcp.f32 %v1125_v24  ;;  %655 = vmatpush.msrb.mxu0 %v584_v21  ;;  %698 = vmatpush.msrb.mxu2 %v619_v8  ;;  %v445_v56 = vadd.f32 0.00028619796, %v444_v27  ;;  %v616_v7 = vld [vmem:[#allocation8 + $0x120] sm:$0xff]  ;;  %v334_v12 = vmul.f32 %v1091_v51, %v971_v16  ;;  %v615_v51 = vld [vmem:[#allocation8 + $0x118] sm:$0xff] }
  0xd6   :  { %v309_v49 = vadd.f32 %v1039_v55, %v308_v37  ;;  %v346_v15 = vmul.f32 %v1096_v62, %v1048_v58  ;;  %vm351_vm8 = vweird.f32 %v1096_v62  ;;  %vm355_vm11 = vcmp.eq.f32.partialorder %v354_v6, 8.507059e+37  ;;  %v596_v16 = vld [vmem:[#allocation8 + $0x80] sm:$0xff] }
  0xd7   :  { %v273_v63 = vsel %vm1077_vm3, %v1035_v50, %v269_v41  ;;  %v226_v41 = vmul.f32 0.5, %v944_v2  ;;  %656 = vmatpush.msrb.mxu0 %v583_v34  ;;  %699 = vmatpush.msrb.mxu2 %v618_v36  ;;  %v227_v2 = vmul.f32 0.5, %v946_v3  ;;  %vm1146_vm10 = vmor %vm350_vm9, %vm351_vm8  ;;  %v407_v21 = vadd.f32 0.0036580483, %v406_v43 }
  0xd8   :  { %v278_v50 = vsel %vm1044_vm1, %v277_v31, %v273_v63  ;;  %v313_v25 = vsel %vm1105_vm7, %v1039_v55, %v309_v49  ;;  %v600_v55 = vld [vmem:[#allocation8 + $0xa0] sm:$0xff]  ;;  %v347_v30 = vsub.f32 1.0, %v346_v15  ;;  %v1128_v31 = vmin.f32 %v482_v53, 16.0  ;;  %v581_v53 = vld [vmem:[#allocation8 + $0x8] sm:$0xff] }
  0xd9   :  { %v279_v23 = vmul.f32 %v278_v50, %v1030_v45  ;;  %v318_v57 = vsel %vm1083_vm5, %v317_v20, %v313_v25  ;;  %v635_v45 = vld [vmem:[#allocation8 + $0x1b8] sm:$0xff]  ;;  %678 = vmatpush.msrb.mxu1 %v600_v55  ;;  %v522_v63 = vmul.f32 %v1131_v32, %v1131_v32  ;;  %657 = vmatpush.msrb.mxu0 %v582_v40  ;;  %v373_v50 = vadd.f32 1.1283791, %v372_v9  ;;  %v632_v25 = vld [vmem:[#allocation8 + $0x1a0] sm:$0xff] }
  0xda   :  { %v319_v29 = vmul.f32 %v318_v57, %v1056_v1  ;;  %v348_v37 = vmul.f32 %v1096_v62, %v347_v30  ;;  %721 = vmatpush.msrb.mxu3 %v635_v45  ;;  %v484_v38 = vmul.f32 2.1237322e-06, %v1128_v31  ;;  %700 = vmatpush.msrb.mxu2 %v617_v46  ;;  %v580_v15 = vld [vmem:[#allocation8] sm:$0xff]  ;;  %v228_v55 = vmul.f32 0.5, %v965_v13  ;;  %v614_v30 = vld [vmem:[#allocation8 + $0x110] sm:$0xff] }
  0xdb   :  { %v767_v33 = vclamps-f32 %v279_v23, 1.0  ;;  %679 = vmatpush.msrb.mxu1 %v599_v35  ;;  %v1159_v17 = vpop.eup %789  ;;  %v1161_v23 = vmin.f32 %v522_v63, 16.0  ;;  %658 = vmatpush.msrb.mxu0 %v581_v53  ;;  %v446_v8 = vmul.f32 %v445_v56, %v1110_v10  ;;  %v415_v45 = vmul.f32 3.8918573e-05, %v1033_v47  ;;  %v630_v35 = vld [vmem:[#allocation8 + $0x190] sm:$0xff]  ;;  %v612_v46 = vld [vmem:[#allocation8 + $0x100] sm:$0xff] }
  0xdc   :  { %v768_v1 = vclamps-f32 %v319_v29, 1.0  ;;  %v349_v49 = vadd.f32 %v1096_v62, %v348_v37  ;;  %722 = vmatpush.msrb.mxu3 %v634_v39  ;;  %v386_v58 = vmul.f32 %v1159_v17, %v1125_v24  ;;  %v485_v6 = vadd.f32 0.00028619796, %v484_v38  ;;  %701 = vmatpush.msrb.mxu2 %v616_v7  ;;  %v613_v37 = vld [vmem:[#allocation8 + $0x108] sm:$0xff] }
  0xdd   :  { %v562_v20 = vadd.f32 1.0, %v767_v33  ;;  %680 = vmatpush.msrb.mxu1 %v598_v44  ;;  %v524_v29 = vmul.f32 2.1237322e-06, %v1161_v23  ;;  %659 = vmatpush.msrb.mxu0 %v580_v15  ;;  %v374_v27 = vmul.f32 %v373_v50, %v976_v22  ;;  %v455_v36 = vmul.f32 3.8918573e-05, %v1110_v10  ;;  %v629_v22 = vld [vmem:[#allocation8 + $0x188] sm:$0xff] }
  0xde   :  { %v563_v48 = vadd.f32 1.0, %v768_v1  ;;  %v353_v3 = vsel %vm1146_vm10, %v1096_v62, %v349_v49  ;;  %723 = vmatpush.msrb.mxu3 %v633_v52  ;;  %v387_v34 = vsub.f32 1.0, %v386_v58  ;;  %702 = vmatpush.msrb.mxu2 %v615_v51  ;;  %vm390_vm12 = vweird.f32 %v1125_v24  ;;  %v628_v52 = vld [vmem:[#allocation8 + $0x180] sm:$0xff] }
  0xdf   :  { %v570_v5 = vmul.f32 %v562_v20, %v226_v41  ;;  %v358_v18 = vsel %vm355_vm11, %v357_v4, %v353_v3  ;;  %681 = vmatpush.msrb.mxu1 %v597_v0  ;;  %v394_v13 = vand.u32 2147483647, %v1125_v24  ;;  %v396_v1 = vand.u32 2147483648, %v1125_v24 }
  0xe0   :  { %v571_v62 = vmul.f32 %v563_v48, %v227_v2  ;;  %v359_v57 = vmul.f32 %v358_v18, %v334_v12  ;;  %724 = vmatpush.msrb.mxu3 %v632_v25  ;;  %v416_v9 = vadd.f32 0.001143296, %v415_v45  ;;  %v388_v40 = vmul.f32 %v1159_v17, %v387_v34  ;;  %703 = vmatpush.msrb.mxu2 %v614_v30 }
  0xe1   :  { %682 = vmatpush.msrb.mxu1 %v596_v16  ;;  %660 = vmatmul.f32.vlgmr.msrb.gmra.mxu0 %v570_v5  ;;  %vm391_vm13 = vweird.f32 %v1159_v17  ;;  %v456_v41 = vadd.f32 0.001143296, %v455_v36  ;;  %v447_v20 = vadd.f32 0.0036580483, %v446_v8  ;;  %v486_v43 = vmul.f32 %v485_v6, %v1128_v31 }
  0xe2   :  { %v769_v33 = vclamps-f32 %v359_v57, 1.0  ;;  %725 = vmatpush.msrb.mxu3 %v631_v28  ;;  %683 = vmatmul.f32.vlgmr.msrb.gmra.mxu1 %v571_v62  ;;  %v525_v44 = vadd.f32 0.00028619796, %v524_v29  ;;  %v417_v48 = vmul.f32 %v416_v9, %v1033_v47  ;;  %v389_v38 = vadd.f32 %v1159_v17, %v388_v40  ;;  %vm392_vm14 = vmor %vm390_vm12, %vm391_vm13 }
  0xe3   :  { %704 = vmatpush.msrb.mxu2 %v613_v37  ;;  %v457_v53 = vmul.f32 %v456_v41, %v1110_v10  ;;  %v495_v2 = vmul.f32 3.8918573e-05, %v1128_v31  ;;  %vm395_vm15 = vcmp.eq.f32.partialorder %v394_v13, 8.507059e+37  ;;  %v397_v54 = vor.u32 1.1754944e-38, %v396_v1 }
  0xe4   :  { %v564_v39 = vadd.f32 1.0, %v769_v33  ;;  %726 = vmatpush.msrb.mxu3 %v630_v35  ;;  %v408_v4 = vmul.f32 %v407_v21, %v1033_v47  ;;  %v418_v56 = vadd.f32 0.014752088, %v417_v48  ;;  %v393_v63 = vsel %vm392_vm14, %v1159_v17, %v389_v38 }
  0xe5   :  { %705 = vmatpush.msrb.mxu2 %v612_v46  ;;  %v458_v0 = vadd.f32 0.014752088, %v457_v53  ;;  %v496_v7 = vadd.f32 0.001143296, %v495_v2  ;;  %v535_v12 = vmul.f32 3.8918573e-05, %v1161_v23  ;;  %v398_v3 = vsel %vm395_vm15, %v397_v54, %v393_v63 }
  0xe6   :  { %v572_v49 = vmul.f32 %v564_v39, %v228_v55  ;;  %727 = vmatpush.msrb.mxu3 %v629_v22  ;;  %v448_v50 = vmul.f32 %v447_v20, %v1110_v10  ;;  %v487_v25 = vadd.f32 0.0036580483, %v486_v43  ;;  %v526_v24 = vmul.f32 %v525_v44, %v1161_v23 }
  0xe7   :  { %v399_v15 = vmul.f32 %v398_v3, %v374_v27  ;;  %v419_v5 = vmul.f32 %v418_v56, %v1033_v47  ;;  %v459_v18 = vmul.f32 %v458_v0, %v1110_v10  ;;  %v497_v17 = vmul.f32 %v496_v7, %v1128_v31 }
  0xe8   :  { %728 = vmatpush.msrb.mxu3 %v628_v52  ;;  %706 = vmatmul.f32.vlgmr.msrb.gmra.mxu2 %v572_v49  ;;  %v409_v21 = vadd.f32 0.05243302, %v408_v4  ;;  %v536_v16 = vadd.f32 0.001143296, %v535_v12  ;;  %v229_v51 = vmul.f32 0.5, %v967_v14  ;;  %v488_v28 = vmul.f32 %v487_v25, %v1128_v31 }
  0xe9   :  { %v770_v62 = vclamps-f32 %v399_v15, 1.0  ;;  %v420_v57 = vadd.f32 0.112945676, %v419_v5  ;;  %v460_v58 = vadd.f32 0.112945676, %v459_v18  ;;  %v1219_v18 = vmul.f32 0.5, %v1002_v59 }
  0xea   :  { %v449_v6 = vadd.f32 0.05243302, %v448_v50  ;;  %v498_v55 = vadd.f32 0.014752088, %v497_v17  ;;  %v537_v8 = vmul.f32 %v536_v16, %v1161_v23  ;;  %v527_v30 = vadd.f32 0.0036580483, %v526_v24 }
  0xeb   :  { %v565_v29 = vadd.f32 1.0, %v770_v62  ;;  %v421_v45 = vmul.f32 %v420_v57, %v1033_v47  ;;  %v461_v33 = vmul.f32 %v460_v58, %v1110_v10  ;;  %v410_v27 = vmul.f32 %v409_v21, %v1033_v47 }
  0xec   :  { %v499_v34 = vmul.f32 %v498_v55, %v1128_v31  ;;  %v538_v14 = vadd.f32 0.014752088, %v537_v8  ;;  %v450_v1 = vmul.f32 %v449_v6, %v1110_v10  ;;  %v489_v39 = vadd.f32 0.05243302, %v488_v28 }
  0xed   :  { %v573_v35 = vmul.f32 %v565_v29, %v229_v51  ;;  %v422_v36 = vadd.f32 0.4994258, %v421_v45  ;;  %v462_v13 = vadd.f32 0.4994258, %v461_v33  ;;  %v528_v40 = vmul.f32 %v527_v30, %v1161_v23 }
  0xee   :  { %v500_v37 = vadd.f32 0.112945676, %v499_v34  ;;  %v539_v9 = vmul.f32 %v538_v14, %v1161_v23  ;;  %v411_v20 = vadd.f32 0.18741608, %v410_v27  ;;  %v451_v49 = vadd.f32 0.18741608, %v450_v1 }
  0xef   :  { %729 = vmatmul.f32.vlgmr.msrb.gmra.mxu3 %v573_v35  ;;  %v423_v22 = vmul.f32 %v422_v36, %v1033_v47  ;;  %v463_v41 = vmul.f32 %v462_v13, %v1110_v10  ;;  %v490_v53 = vmul.f32 %v489_v39, %v1128_v31  ;;  %v529_v2 = vadd.f32 0.05243302, %v528_v40 }
  0xf0   :  { %v501_v43 = vmul.f32 %v500_v37, %v1128_v31  ;;  %v540_v44 = vadd.f32 0.112945676, %v539_v9  ;;  %v412_v54 = vmul.f32 %v411_v20, %v1033_v47  ;;  %v452_v63 = vmul.f32 %v451_v49, %v1110_v10 }
  0xf1   :  { %v424_v46 = vadd.f32 1.0, %v423_v22  ;;  %v464_v48 = vadd.f32 1.0, %v463_v41  ;;  %v491_v0 = vadd.f32 0.18741608, %v490_v53  ;;  %v530_v7 = vmul.f32 %v529_v2, %v1161_v23 }
  0xf2   :  { %v502_v38 = vadd.f32 0.4994258, %v501_v43  ;;  %v541_v52 = vmul.f32 %v540_v44, %v1161_v23  ;;  %v413_v50 = vadd.f32 1.1283791, %v412_v54  ;;  %v453_v15 = vadd.f32 1.1283791, %v452_v63 }
  0xf3   :  { %791 = vrcp.f32 %v424_v46  ;;  %v492_v10 = vmul.f32 %v491_v0, %v1128_v31  ;;  %v531_v17 = vadd.f32 0.18741608, %v530_v7  ;;  %v1224_v51 = vmul.f32 0.5, %v1027_v42 }
  0xf4   :  { %793 = vrcp.f32 %v464_v48  ;;  %v503_v4 = vmul.f32 %v502_v38, %v1128_v31  ;;  %v542_v56 = vadd.f32 0.4994258, %v541_v52  ;;  %v414_v16 = vmul.f32 %v413_v50, %v1011_v19 }
  0xf5   :  { %v434_v57 = vand.u32 2147483647, %v424_v46  ;;  %v436_v58 = vand.u32 2147483648, %v424_v46  ;;  %v474_v28 = vand.u32 2147483647, %v464_v48  ;;  %v454_v55 = vmul.f32 %v453_v15, %v1051_v60 }
  0xf6   :  { %v1212_v12 = vadd.f32 1.0, %v503_v4  ;;  %v543_v3 = vmul.f32 %v542_v56, %v1161_v23  ;;  %v476_v8 = vand.u32 2147483648, %v464_v48  ;;  %v493_v29 = vadd.f32 1.1283791, %v492_v10 }
  0xf7   :  { %v532_v30 = vmul.f32 %v531_v17, %v1161_v23  ;;  %vm430_vm2 = vweird.f32 %v424_v46  ;;  %vm470_vm3 = vweird.f32 %v464_v48  ;;  %vm435_vm5 = vcmp.eq.f32.partialorder %v434_v57, 8.507059e+37 }
  0xf8   :  { %795 = vrcp.f32 %v1212_v12  ;;  %v1216_v5 = vadd.f32 1.0, %v543_v3  ;;  %v437_v33 = vor.u32 1.1754944e-38, %v436_v58  ;;  %vm475_vm6 = vcmp.eq.f32.partialorder %v474_v28, 8.507059e+37 }
  0xf9   :  { %v792_v25 = vpop.eup %791  ;;  %v477_v14 = vor.u32 1.1754944e-38, %v476_v8  ;;  %v516_v36 = vand.u32 2147483648, %v1212_v12  ;;  %v514_v1 = vand.u32 2147483647, %v1212_v12  ;;  %v533_v22 = vadd.f32 1.1283791, %v532_v30 }
  0xfa   :  { %v794_v24 = vpop.eup %793  ;;  %v426_v47 = vmul.f32 %v792_v25, %v424_v46  ;;  %797 = vrcp.f32 %v1216_v5  ;;  %vm431_vm0 = vweird.f32 %v792_v25  ;;  %vm510_vm9 = vweird.f32 %v1212_v12 }
  0xfb   :  { %v466_v21 = vmul.f32 %v794_v24, %v464_v48  ;;  %vm471_vm1 = vweird.f32 %v794_v24  ;;  %vm432_vm4 = vmor %vm430_vm2, %vm431_vm0  ;;  %v517_v46 = vor.u32 1.1754944e-38, %v516_v36  ;;  %v556_v48 = vand.u32 2147483648, %v1216_v5 }
  0xfc   :  { %v427_v62 = vsub.f32 1.0, %v426_v47  ;;  %vm472_vm7 = vmor %vm470_vm3, %vm471_vm1  ;;  %v554_v52 = vand.u32 2147483647, %v1216_v5  ;;  %v494_v53 = vmul.f32 %v493_v29, %v1067_v26  ;;  %vm515_vm12 = vcmp.eq.f32.partialorder %v514_v1, 8.507059e+37 }
  0xfd   :  { %v467_v6 = vsub.f32 1.0, %v466_v21  ;;  %vm550_vm13 = vweird.f32 %v1216_v5  ;;  %v534_v3 = vmul.f32 %v533_v22, %v1131_v32  ;;  %v232_v47 = vmul.f32 0.5, %v1053_v61 }
  0xfe   :  { %v428_v59 = vmul.f32 %v792_v25, %v427_v62  ;;  %v796_v31 = vpop.eup %795  ;;  %vm555_vm15 = vcmp.eq.f32.partialorder %v554_v52, 8.507059e+37 }
  0xff   :  { %v468_v19 = vmul.f32 %v794_v24, %v467_v6  ;;  %v506_v45 = vmul.f32 %v796_v31, %v1212_v12  ;;  %vm511_vm8 = vweird.f32 %v796_v31  ;;  %v557_v12 = vor.u32 1.1754944e-38, %v556_v48 }
 0x100   :  { %v429_v42 = vadd.f32 %v792_v25, %v428_v59  ;;  %v798_v60 = vpop.eup %797  ;;  %vm512_vm10 = vmor %vm510_vm9, %vm511_vm8 }
 0x101   :  { %v469_v27 = vadd.f32 %v794_v24, %v468_v19  ;;  %v507_v35 = vsub.f32 1.0, %v506_v45  ;;  %v546_v37 = vmul.f32 %v798_v60, %v1216_v5  ;;  %vm551_vm11 = vweird.f32 %v798_v60 }
 0x102   :  { %v433_v34 = vsel %vm432_vm4, %v792_v25, %v429_v42  ;;  %vm552_vm14 = vmor %vm550_vm13, %vm551_vm11 }
 0x103   :  { %v438_v23 = vsel %vm435_vm5, %v437_v33, %v433_v34  ;;  %v473_v13 = vsel %vm472_vm7, %v794_v24, %v469_v27  ;;  %v508_v40 = vmul.f32 %v796_v31, %v507_v35  ;;  %v547_v20 = vsub.f32 1.0, %v546_v37 }
 0x104   :  { %v439_v9 = vmul.f32 %v438_v23, %v414_v16  ;;  %v478_v39 = vsel %vm475_vm6, %v477_v14, %v473_v13 }
 0x105   :  { %v479_v41 = vmul.f32 %v478_v39, %v454_v55  ;;  %v509_v44 = vadd.f32 %v796_v31, %v508_v40  ;;  %v548_v38 = vmul.f32 %v798_v60, %v547_v20 }
 0x106   :  { %v771_v43 = vclamps-f32 %v439_v9, 1.0 }
 0x107   :  { %v772_v49 = vclamps-f32 %v479_v41, 1.0  ;;  %v513_v54 = vsel %vm512_vm10, %v796_v31, %v509_v44  ;;  %v549_v63 = vadd.f32 %v798_v60, %v548_v38 }
 0x108   :  { %v566_v2 = vadd.f32 1.0, %v771_v43  ;;  %v518_v56 = vsel %vm515_vm12, %v517_v46, %v513_v54 }
 0x109   :  { %v567_v4 = vadd.f32 1.0, %v772_v49  ;;  %v519_v7 = vmul.f32 %v518_v56, %v494_v53  ;;  %v553_v25 = vsel %vm552_vm14, %v798_v60, %v549_v63 }
 0x10a   :  { %v574_v0 = vmul.f32 %v566_v2, %v1219_v18  ;;  %v558_v24 = vsel %vm555_vm15, %v557_v12, %v553_v25  ;;  %v233_v18 = vmul.f32 0.5, %v1112_v11 }
 0x10b   :  { %v575_v50 = vmul.f32 %v567_v4, %v1224_v51  ;;  %v773_v26 = vclamps-f32 %v519_v7, 1.0  ;;  %v559_v15 = vmul.f32 %v558_v24, %v534_v3 }
 0x10c   :  { %663 = vmatmul.f32.gmra.mxu0 %v574_v0 }
 0x10d   :  { %686 = vmatmul.f32.gmra.mxu1 %v575_v50  ;;  %v568_v10 = vadd.f32 1.0, %v773_v26  ;;  %v774_v5 = vclamps-f32 %v559_v15, 1.0 }
 0x10f   :  { %v576_v17 = vmul.f32 %v568_v10, %v232_v47  ;;  %v569_v21 = vadd.f32 1.0, %v774_v5 }
 0x111   :  { %709 = vmatmul.f32.gmra.mxu2 %v576_v17  ;;  %v577_v16 = vmul.f32 %v569_v21, %v233_v18 }
 0x113   :  { %732 = vmatmul.f32.gmra.mxu3 %v577_v16 }
 0x15e   :  { %v661_v32 = vpop.f32.mrf.mxu0 }
 0x15f   :  { %v684_v51 = vpop.f32.mrf.mxu1 }
 0x160   :  { %v685_v57 = vadd.f32 %v684_v51, %v661_v32 }
 0x16b   :  { %v707_v62 = vpop.f32.mrf.mxu2 }
 0x16c   :  { %v708_v58 = vadd.f32 %v707_v62, %v685_v57 }
 0x172   :  { %v730_v6 = vpop.f32.mrf.mxu3 }
 0x173   :  { %v731_v28 = vadd.f32 %v730_v6, %v708_v58 }
 0x175   :  { %745 = vst [vmem:[#allocation9] sm:$0xff] %v731_v28 }
 0x189   :  { %v664_v55 = vpop.f32.mrf.mxu0 }
 0x18a   :  { %v687_v59 = vpop.f32.mrf.mxu1 }
 0x18b   :  { %v688_v61 = vadd.f32 %v687_v59, %v664_v55 }
 0x194   :  { %v710_v8 = vpop.f32.mrf.mxu2 }
 0x195   :  { %v711_v31 = vadd.f32 %v710_v8, %v688_v61 }
 0x196   :  { %v733_v11 = vpop.f32.mrf.mxu3 }
 0x197   :  { %v734_v29 = vadd.f32 %v733_v11, %v711_v31 }
 0x199   :  { %746 = vst [vmem:[#allocation9 + $0x8] sm:$0xff] %v734_v29 }
 0x19a   :  { %759 = dma.vmem_to_hbm [thread:$0]  %s752_s29, 256, %s754_s5, [#allocation5], %s905_s24, %s905_s24, %s906_s25  }
 0x19b   :  { %899 = dma.done.wait [#allocation5], 256  }
 0x19c   :  { %900 = vsyncadd [#allocation5], 4294967040 }
 0x19d   :  { %764 = vsyncpa [#allocation4], 1 }
 0x19e   :  { %765 = vsyncpa [#allocation7], 1 }
 0x19f   :  { %766 = vsyncpa [#allocation5], 1 }

</bundles_post_ra>
